<compile_context>
chip_gen: v7x
topology: tpu7x:2x2x1
jax: 0.10.0
libtpu: 0.0.40
codegen_flags: <defaults>
</compile_context>

<pallas_src>
import math

import jax
import jax.numpy as jnp
from jax.experimental import pallas as pl
from jax.experimental.pallas import tpu as pltpu


def _pe_add_kernel(x_ref, pe_ref, o_ref):
    # x_ref: (TM, W) tile; pe_ref: (1, W) lane-dense positional row.
    # Pure VPU broadcast add over sublanes.
    o_ref[...] = x_ref[...] + pe_ref[...]


def build_pe_table(d_model: int, max_len: int = 28,
                   dtype=jnp.float32) -> jnp.ndarray:
    """Sinusoidal table identical to the torch __init__, stored lane-dense.

    Returns (max_len, LANE) where each row is the d_model-wide pe row tiled
    LANE // d_model times (LANE = 128 when 128 % d_model == 0, else d_model),
    already cast to the model dtype.  pe_lane[p, :d_model] is the plain row.
    """
    position = jnp.arange(0, max_len, dtype=jnp.float32)[:, None]          # (L, 1)
    div_term = jnp.exp(jnp.arange(0, d_model, 2, dtype=jnp.float32)
                       * (-math.log(10000.0) / d_model))                   # (D/2,)
    pe = jnp.zeros((max_len, d_model), dtype=jnp.float32)
    pe = pe.at[:, 0::2].set(jnp.sin(position * div_term))
    pe = pe.at[:, 1::2].set(jnp.cos(position * div_term))

    if d_model % 128 == 0:
        reps = 1                      # already lane-dense
    elif 128 % d_model == 0:
        reps = 128 // d_model         # tile up to a full 128-lane row
    else:
        reps = 1                      # fallback: keep native width
    return jnp.tile(pe, (1, reps)).astype(dtype)                           # (L, LANE)


def positional_encoding_forward(x: jnp.ndarray, pe_lane: jnp.ndarray,
                                dropout_p: float = 0.1) -> jnp.ndarray:
    """x: (S, B, D);  pe_lane: (max_len, LANE) from build_pe_table."""
    S, B, D = x.shape
    max_len, LANE = pe_lane.shape
    if S >= max_len:
        # torch would raise IndexError on pe[:, S]; JAX would silently clamp.
        raise ValueError(f"seq_len {S} out of range for pe table (max_len={max_len})")

    pe_row = pe_lane[S][None, :]                                           # (1, LANE)
    if pe_row.dtype != x.dtype:
        pe_row = pe_row.astype(x.dtype)

    total = S * B * D
    if LANE % D == 0 and total % LANE == 0:
        # Lane-dense slab: each LANE-wide row holds LANE//D consecutive tokens,
        # all of which receive the same (pre-tiled) pe row.
        x2d = x.reshape(total // LANE, LANE)
    else:
        # Fallback: (S*B, D) slab with the plain (1, D) pe row (masked stores
        # if D < 128, but always correct).
        x2d = x.reshape(S * B, D)
        pe_row = pe_row[:, :D]

    M, W = x2d.shape

    # Tile rows: ~1024 rows of a 128-lane f32 slab = 512 KiB/block, so
    # input+output double-buffered stays ~2 MiB -> comfortably inside the
    # scoped VMEM default on v5e/v6e/v7x.  Small inputs use a single full block.
    TM = min(M, 1024)            # 1024 is a multiple of 8; TM==M is full-dim.
    grid = (pl.cdiv(M, TM),)

    out2d = pl.pallas_call(
        _pe_add_kernel,
        out_shape=jax.ShapeDtypeStruct((M, W), x.dtype),
        grid=grid,
        in_specs=[
            pl.BlockSpec((TM, W), lambda i: (i, 0)),   # streamed row tiles
            pl.BlockSpec((1, W), lambda i: (0, 0)),    # pe row: VMEM-resident
        ],
        out_specs=pl.BlockSpec((TM, W), lambda i: (i, 0)),
        compiler_params=pltpu.CompilerParams(
            dimension_semantics=("parallel",)),        # megacore-shardable on v7x
        # input_output_aliases={0: 0} would make the add in-place (no extra HBM
        # buffer); omitted here to keep the example input reusable.
    )(x2d, pe_row)

    out = out2d.reshape(S, B, D)
    # nn.Dropout is identity in eval/inference mode; dropout_p is unused here.
    # TODO(synk): training-mode dropout (pltpu.prng_seed + stateful_bernoulli) if needed.
    return out


if __name__ == "__main__":
    d_model = 32
    max_len = 28
    S, B = 8, 2            # seq length must be < max_len for pe[:, S] to be valid

    key = jax.random.PRNGKey(0)
    x = jax.random.normal(key, (S, B, d_model), dtype=jnp.float32)

    pe_lane = build_pe_table(d_model, max_len, dtype=x.dtype)   # (28, 128)
    out = positional_encoding_forward(x, pe_lane, dropout_p=0.1)
    out = jax.block_until_ready(out)

    # Pure-JAX reference of the torch forward: x + pe[:, S] broadcast over (S, B, D).
    ref = x + pe_lane[S, :d_model][None, None, :]
    assert out.shape == x.shape
    assert jnp.allclose(out, ref, atol=1e-6), "mismatch vs reference"
    print("KERNEL_OK")
</pallas_src>

<mosaic_0001>
module attributes {stable_mosaic.version = 11 : i64} {
  func.func @_pe_add_kernel(%arg0: i32, %arg1: memref<4x128xf32, #tpu.memory_space<vmem>>, %arg2: memref<1x128xf32, #tpu.memory_space<vmem>>, %arg3: memref<4x128xf32, #tpu.memory_space<vmem>>) attributes {dimension_semantics = [#tpu.dimension_semantics<parallel>], iteration_bounds = array<i64: 1>, scalar_prefetch = 0 : i64, scratch_operands = 0 : i64, tpu.core_type = #tpu.core_type<tc>, window_params = [{transform_indices = @transform_0, window_bounds = array<i64: 4, 128>}, {pipeline_mode = #tpu.pipeline_mode<synchronous>, transform_indices = @transform_1, window_bounds = array<i64: 1, 128>}, {transform_indices = @transform_2, window_bounds = array<i64: 4, 128>}]} {
    %c0 = arith.constant 0 : index
    %c0_0 = arith.constant 0 : index
    %0 = vector.load %arg1[%c0, %c0_0] : memref<4x128xf32, #tpu.memory_space<vmem>>, vector<4x128xf32>
    %c0_1 = arith.constant 0 : index
    %c0_2 = arith.constant 0 : index
    %1 = vector.load %arg2[%c0_1, %c0_2] : memref<1x128xf32, #tpu.memory_space<vmem>>, vector<1x128xf32>
    %2 = vector.broadcast %1 : vector<1x128xf32> to vector<4x128xf32>
    %3 = arith.addf %0, %2 : vector<4x128xf32>
    %c0_3 = arith.constant 0 : index
    %c0_4 = arith.constant 0 : index
    %4 = vector.load %arg3[%c0_3, %c0_4] : memref<4x128xf32, #tpu.memory_space<vmem>>, vector<4x128xf32>
    tpu.vector_store %arg3[%c0_3, %c0_4], %3 {strides = array<i32>} : memref<4x128xf32, #tpu.memory_space<vmem>>, vector<4x128xf32>,
    return
  }
  func.func @transform_0(%arg0: i32) -> (i32, i32) {
    %c0_i32 = arith.constant 0 : i32
    %c0_i32_0 = arith.constant 0 : i32
    return %arg0, %c0_i32 : i32, i32
  }
  func.func @transform_1(%arg0: i32) -> (i32, i32) {
    %c0_i32 = arith.constant 0 : i32
    %c0_i32_0 = arith.constant 0 : i32
    %c0_i32_1 = arith.constant 0 : i32
    return %c0_i32, %c0_i32_0 : i32, i32
  }
  func.func @transform_2(%arg0: i32) -> (i32, i32) {
    %c0_i32 = arith.constant 0 : i32
    %c0_i32_0 = arith.constant 0 : i32
    return %arg0, %c0_i32 : i32, i32
  }
}

</mosaic_0001>

<bundles_post_ra>
// kernel: tpu_custom_call.1
= control target key start
LH: loop header
LB: loop body
LE: loop exit
PB: predicated region body
PF: predicated region fallthrough
CT: control target
= control target key end

     0   :  { %7 = vsyncpa [#allocation3], 0  ;;  %s144_s0 = inlined_call_operand.hbm [shape: f32[4,128], index: 0, kind: input, shape index: {}]   ;;  %s145_s1 = inlined_call_operand.vmem [shape: f32[1,128], index: 1, kind: input, shape index: {}]   ;;  %s146_s2 = inlined_call_operand.hbm [shape: f32[4,128], index: 2, kind: output, shape index: {}]  }
   0x1   :  { %8 = vsyncpa [#allocation4], 0  ;;  %s100_s9 = smov [#allocation2]   ;;  %s52_s13 = scalar_lea.hbm %s144_s0, 64 }
   0x2   :  { %s15_s10 = sshll.u32 %s100_s9, 4  ;;  %p53_p0 = scmp.ne.s32.totalorder %s144_s0, %s52_s13  ;;  %s16_s10 = int_to_ptr.vmem [resolvable:$true] %s15_s10 }
   0x3   :  { %p56_p1 = scmp.lt.u32.totalorder %s52_s13, %s144_s0 }
   0x5   :  { %p58_p2 = pnand %p56_p1, %p53_p0 }
   0x7   :  { %61 = shalt.err (!%p58_p2)
}
   0x8   :  { %s62_s18 = scalar_lea.vmem %s16_s10, 64  ;;  %p67_p4 = scmp.lt.s32.totalorder %s16_s10, %s16_s10 }
   0x9   :  { %p63_p3 = scmp.ne.s32.totalorder %s16_s10, %s62_s18  ;;  %p68_p5 = scmp.lt.s32.totalorder %s62_s18, %s62_s18 }
   0xb   :  { %p69_p6 = por %p68_p5, %p67_p4 }
   0xd   :  { %p70_p7 = pnand %p69_p6, %p63_p3 }
   0xf   :  { %73 = shalt.err (!%p70_p7)
}
  0x10   :  { %18 = dma.hbm_to_vmem [thread:$0]  %s144_s0, 64, %s16_s10, [#allocation3]  }
  0x11   :  { %96 = dma.done.wait [#allocation3], 64  }
  0x12   :  { %97 = vsyncadd [#allocation3], 4294967232  ;;  %s101_s21 = smov [#allocation5]   ;;  %v24_v0 = vld [vmem:[#allocation2] sm:$0xf] }
  0x13   :  { %s40_s22 = sshll.u32 %s101_s21, 4  ;;  %v49_v1 = vld [vmem:[%s145_s1] ss:$0 sm:$0xff]  ;;  %s41_s22 = int_to_ptr.vmem [resolvable:$true] %s40_s22 }
  0x14   :  { %v32_v2 = vadd.f32 %v49_v1, %v24_v0  ;;  %s74_s25 = scalar_lea.vmem %s41_s22, 64  ;;  %p79_p9 = scmp.lt.s32.totalorder %s41_s22, %s41_s22 }
  0x15   :  { %p75_p8 = scmp.ne.s32.totalorder %s41_s22, %s74_s25  ;;  %p80_p10 = scmp.lt.s32.totalorder %s74_s25, %s74_s25 }
  0x16   :  { %33 = vst [vmem:[#allocation5] sm:$0xf] %v32_v2 }
  0x17   :  { %p81_p11 = por %p80_p10, %p79_p9 }
  0x19   :  { %p82_p12 = pnand %p81_p11, %p75_p8 }
  0x1b   :  { %85 = shalt.err (!%p82_p12)
}
  0x1c   :  { %s86_s27 = scalar_lea.hbm %s146_s2, 64 }
  0x1d   :  { %p87_p13 = scmp.ne.s32.totalorder %s146_s2, %s86_s27  ;;  %p90_p0 = scmp.lt.u32.totalorder %s86_s27, %s146_s2 }
  0x1f   :  { %p92_p1 = pnand %p90_p0, %p87_p13 }
  0x21   :  { %95 = shalt.err (!%p92_p1)
}
  0x22   :  { %43 = dma.vmem_to_hbm [thread:$0]  %s41_s22, 64, %s146_s2, [#allocation4]  }
  0x23   :  { %98 = dma.done.wait [#allocation4], 64  }
  0x24   :  { %99 = vsyncadd [#allocation4], 4294967232 }
  0x25   :  { %47 = vsyncpa [#allocation3], 1 }
  0x26   :  { %48 = vsyncpa [#allocation4], 1 }

</bundles_post_ra>
